<compile_context>
chip_gen: v6e
topology: v6e:2x2x1
jax: 0.10.0
libtpu: 0.0.40
codegen_flags: <defaults>
</compile_context>

<pallas_src>
import math

import jax
import jax.numpy as jnp
from jax.experimental import pallas as pl
from jax.experimental.pallas import tpu as pltpu


_INV_SQRT2 = 1.0 / math.sqrt(2.0)


def _round_up(x, m):
    return ((x + m - 1) // m) * m


def _cdiv(a, b):
    return (a + b - 1) // b


def _gelu_exact(h):
    # torch.nn.GELU(approximate='none'): 0.5*x*(1+erf(x/sqrt(2))), computed in f32.
    # (bf16-GELU / tanh-approx would offload work to VPU/EUP but changes numerics.)
    return 0.5 * h * (1.0 + jax.lax.erf(h * _INV_SQRT2))


def _mlp_kernel_resident(x_ref, w1_ref, b1_ref, w2_ref, b2_ref, o_ref):
    """th == H (weights fully resident): fc1 -> GELU -> fc2, no accumulator scratch."""
    x = x_ref[...].astype(w1_ref.dtype)  # cast activations in-kernel (saves an HBM pass)
    h = jnp.dot(x, w1_ref[...], preferred_element_type=jnp.float32)
    h = _gelu_exact(h + b1_ref[...].astype(jnp.float32))
    y = jnp.dot(h.astype(w2_ref.dtype), w2_ref[...], preferred_element_type=jnp.float32)
    o_ref[...] = (y + b2_ref[...].astype(jnp.float32)).astype(o_ref.dtype)


def _mlp_kernel_htiled(x_ref, w1_ref, b1_ref, w2_ref, b2_ref, o_ref, acc_ref):
    """Hidden dim tiled over grid axis 1 ("arbitrary"); f32 accumulator in VMEM scratch."""
    h_idx = pl.program_id(1)

    @pl.when(h_idx == 0)
    def _init():
        # Seed the accumulator with the fc2 bias so finalize is a pure cast.
        acc_ref[...] = jnp.broadcast_to(b2_ref[...].astype(jnp.float32), acc_ref.shape)

    x = x_ref[...].astype(w1_ref.dtype)
    h = jnp.dot(x, w1_ref[...], preferred_element_type=jnp.float32)
    h = _gelu_exact(h + b1_ref[...].astype(jnp.float32))
    acc_ref[...] += jnp.dot(
        h.astype(w2_ref.dtype), w2_ref[...], preferred_element_type=jnp.float32
    )

    @pl.when(h_idx == pl.num_programs(1) - 1)
    def _finalize():
        o_ref[...] = acc_ref[...].astype(o_ref.dtype)


def mlp_pallas(x, w1, b1, w2, b2, *, tile_m=512, tile_h=None, compute_dtype=jnp.bfloat16):
    """x: (B, N, C); w1: (C, H); b1: (H,); w2: (H, O); b2: (O,). Returns (B, N, O)."""
    B, N, C = x.shape
    H = w1.shape[1]
    O = w2.shape[1]
    M = B * N
    out_dtype = x.dtype
    if compute_dtype is None:
        compute_dtype = x.dtype
    compute_dtype = jnp.dtype(compute_dtype)

    x_isz = jnp.dtype(x.dtype).itemsize
    isz = compute_dtype.itemsize
    osz = jnp.dtype(out_dtype).itemsize

    # Per-TensorCore VMEM capacity (v5e/v6e: 128 MiB, v7x: 64 MiB); leave headroom.
    try:
        vmem_cap = int(pltpu.get_tpu_info().vmem_capacity_bytes)
    except Exception:
        vmem_cap = 64 * 1024 * 1024  # conservative (v7x-sized) fallback
    budget = vmem_cap - max(8 << 20, vmem_cap // 8)

    # Row tile: large enough to cover weight DMA with MXU work, multiple of 8, capped so
    # the "parallel" M axis has >= 2 tiles (keeps both v7x TensorCores busy).
    tm = max(8, min(_round_up(tile_m, 8), _round_up(_cdiv(M, 2), 8)))

    def vmem_est(tm_, th_):
        b = 2 * x_isz * tm_ * C                       # x tile (double-buffered, at x dtype)
        b += isz * tm_ * C                            # in-kernel cast of x
        b += 2 * osz * tm_ * O                        # output tile (double-buffered)
        b += 2 * isz * (C * th_ + th_ * O + th_ + O)  # weight/bias slices (double-buffered)
        b += (4 + isz) * tm_ * th_                    # f32 intermediate h + its cast
        if H // th_ > 1:
            b += 4 * tm_ * O                          # f32 accumulator scratch
        return b

    # Hidden tile: prefer th == H (weights fetched from HBM exactly once); otherwise the
    # largest multiple-of-128 divisor of H whose slices fit the VMEM budget.
    if tile_h is not None and H % tile_h == 0 and (tile_h % 128 == 0 or tile_h == H):
        th = tile_h
    elif H % 128 != 0 or vmem_est(tm, H) <= budget:
        th = H
    else:
        divs = [d for d in range(128, H, 128) if H % d == 0]
        divs.sort(reverse=True)
        th = next((d for d in divs if vmem_est(tm, d) <= budget), divs[-1] if divs else H)

    # If still over budget, shrink the row tile.
    while tm > 8 and vmem_est(tm, th) > budget:
        tm = max(8, _round_up(tm // 2, 8))

    n_m = _cdiv(M, tm)  # ragged tail handled by Pallas block masking (no wrapper pad)
    n_h = H // th

    x2d = x.reshape(M, C)          # cast to compute_dtype happens inside the kernel
    w1c = w1.astype(compute_dtype)
    w2c = w2.astype(compute_dtype)
    b1_2d = b1.reshape(1, H)
    b2_2d = b2.reshape(1, O)

    est = vmem_est(tm, th)
    vmem_limit = int(min(vmem_cap - (1 << 20), max(32 << 20, est + (8 << 20))))

    # Weights are streamed once when resident (th == H); otherwise once per row tile.
    w_reads = 1 if n_h == 1 else n_m
    cost = pl.CostEstimate(
        flops=2 * M * C * H + 2 * M * H * O,
        transcendentals=M * H,
        bytes_accessed=int(
            M * C * x_isz + w_reads * (C * H + H * O + H + O) * isz + M * O * osz
        ),
    )

    def call(single_buffer_weights):
        wkw = dict(pipeline_mode=pl.Buffered(1)) if single_buffer_weights else {}
        if n_h == 1:
            grid = (n_m,)
            in_specs = [
                pl.BlockSpec((tm, C), lambda i: (i, 0)),          # x row tile
                pl.BlockSpec((C, th), lambda i: (0, 0), **wkw),   # w1 (grid-invariant)
                pl.BlockSpec((1, th), lambda i: (0, 0), **wkw),   # b1
                pl.BlockSpec((th, O), lambda i: (0, 0), **wkw),   # w2 (grid-invariant)
                pl.BlockSpec((1, O), lambda i: (0, 0), **wkw),    # b2
            ]
            out_spec = pl.BlockSpec((tm, O), lambda i: (i, 0))
            kernel = _mlp_kernel_resident
            scratch = []
            dims = ("parallel",)
        else:
            grid = (n_m, n_h)
            in_specs = [
                pl.BlockSpec((tm, C), lambda i, h: (i, 0)),   # x row tile (reused across h)
                pl.BlockSpec((C, th), lambda i, h: (0, h)),   # w1 hidden slice (columns)
                pl.BlockSpec((1, th), lambda i, h: (0, h)),   # b1 hidden slice
                pl.BlockSpec((th, O), lambda i, h: (h, 0)),   # w2 hidden slice (rows)
                pl.BlockSpec((1, O), lambda i, h: (0, 0)),    # b2
            ]
            out_spec = pl.BlockSpec((tm, O), lambda i, h: (i, 0))
            kernel = _mlp_kernel_htiled
            scratch = [pltpu.VMEM((tm, O), jnp.float32)]
            dims = ("parallel", "arbitrary")
        return pl.pallas_call(
            kernel,
            out_shape=jax.ShapeDtypeStruct((M, O), out_dtype),
            grid=grid,
            in_specs=in_specs,
            out_specs=out_spec,
            scratch_shapes=scratch,
            compiler_params=pltpu.CompilerParams(
                dimension_semantics=dims,
                vmem_limit_bytes=vmem_limit,
            ),
            cost_estimate=cost,
        )(x2d, w1c, b1_2d, w2c, b2_2d)

    # Single-buffer the grid-invariant resident weights (halves their VMEM footprint,
    # important on v7x's 64 MiB); fall back to default double-buffering if unsupported.
    if n_h == 1:
        try:
            out2d = call(True)
        except Exception:
            out2d = call(False)
    else:
        out2d = call(False)

    return out2d.reshape(B, N, O)


def _init_linear(key, fan_in, fan_out, dtype=jnp.float32):
    # Deterministic init mimicking torch.nn.Linear defaults (kaiming-uniform-ish bounds).
    kw, kb = jax.random.split(key)
    bound = 1.0 / math.sqrt(fan_in)
    w = jax.random.uniform(kw, (fan_in, fan_out), dtype, -bound, bound)
    b = jax.random.uniform(kb, (fan_out,), dtype, -bound, bound)
    return w, b


def _ref_mlp(x, w1, b1, w2, b2, compute_dtype=None):
    cd = compute_dtype or x.dtype
    h = jnp.dot(x.astype(cd), w1.astype(cd), preferred_element_type=jnp.float32)
    h = h + b1.astype(jnp.float32)
    h = 0.5 * h * (1.0 + jax.lax.erf(h * _INV_SQRT2))
    y = jnp.dot(h.astype(cd), w2.astype(cd), preferred_element_type=jnp.float32)
    return (y + b2.astype(jnp.float32)).astype(x.dtype)


if __name__ == "__main__":
    key = jax.random.PRNGKey(0)

    # ---- Test 1: small shapes (batch=2, seq=8, C=32, H=64, O=32), explicit f32 matmuls
    #      (tight check, exercises the resident-weight single-buffer fast path).
    B, N, C, Hid, Out = 2, 8, 32, 64, 32
    kx, k1, k2, key = jax.random.split(key, 4)
    x = jax.random.normal(kx, (B, N, C), jnp.float32)
    w1, b1 = _init_linear(k1, C, Hid)
    w2, b2 = _init_linear(k2, Hid, Out)

    y = jax.block_until_ready(mlp_pallas(x, w1, b1, w2, b2, compute_dtype=jnp.float32))
    y_ref = _ref_mlp(x, w1, b1, w2, b2)
    assert y.shape == (B, N, Out)
    assert jnp.allclose(y, y_ref, atol=1e-5, rtol=1e-5), "mismatch vs reference (test 1)"

    # ---- Test 2: default bf16 matmul operands, ragged row tail (M=394) and hidden-dim
    #      tiling (H=384 in 128-slices) -> exercises the accumulator path + store masking.
    B2, N2, C2, H2, O2 = 2, 197, 128, 384, 128
    kx2, k3, k4, key = jax.random.split(key, 4)
    x2 = jax.random.normal(kx2, (B2, N2, C2), jnp.float32)
    w1b, b1b = _init_linear(k3, C2, H2)
    w2b, b2b = _init_linear(k4, H2, O2)

    y2 = jax.block_until_ready(
        mlp_pallas(x2, w1b, b1b, w2b, b2b, tile_m=256, tile_h=128)
    )
    y2_ref_bf16 = _ref_mlp(x2, w1b, b1b, w2b, b2b, compute_dtype=jnp.bfloat16)
    y2_ref_f32 = _ref_mlp(x2, w1b, b1b, w2b, b2b)
    assert y2.shape == (B2, N2, O2)
    assert jnp.allclose(y2, y2_ref_bf16, atol=2e-2, rtol=2e-2), "mismatch vs bf16 reference (test 2)"
    assert jnp.allclose(y2, y2_ref_f32, atol=1e-1, rtol=1e-1), "mismatch vs f32 reference (test 2)"

    print("KERNEL_OK")
</pallas_src>

<mosaic_0001>
module attributes {stable_mosaic.version = 11 : i64} {
  func.func @_mlp_kernel_resident(%arg0: i32, %arg1: memref<8x32xf32, #tpu.memory_space<vmem>>, %arg2: memref<32x64xf32, #tpu.memory_space<vmem>>, %arg3: memref<1x64xf32, #tpu.memory_space<vmem>>, %arg4: memref<64x32xf32, #tpu.memory_space<vmem>>, %arg5: memref<1x32xf32, #tpu.memory_space<vmem>>, %arg6: memref<8x32xf32, #tpu.memory_space<vmem>>) attributes {dimension_semantics = [#tpu.dimension_semantics<parallel>], iteration_bounds = array<i64: 2>, scalar_prefetch = 0 : i64, scratch_operands = 0 : i64, tpu.core_type = #tpu.core_type<tc>, window_params = [{transform_indices = @transform_0, window_bounds = array<i64: 8, 32>}, {pipeline_mode = #tpu.pipeline_mode<synchronous>, transform_indices = @transform_1, window_bounds = array<i64: 32, 64>}, {pipeline_mode = #tpu.pipeline_mode<synchronous>, transform_indices = @transform_2, window_bounds = array<i64: 1, 64>}, {pipeline_mode = #tpu.pipeline_mode<synchronous>, transform_indices = @transform_3, window_bounds = array<i64: 64, 32>}, {pipeline_mode = #tpu.pipeline_mode<synchronous>, transform_indices = @transform_4, window_bounds = array<i64: 1, 32>}, {transform_indices = @transform_5, window_bounds = array<i64: 8, 32>}]} {
    %c0 = arith.constant 0 : index
    %c0_0 = arith.constant 0 : index
    %0 = vector.load %arg1[%c0, %c0_0] : memref<8x32xf32, #tpu.memory_space<vmem>>, vector<8x32xf32>
    %c0_1 = arith.constant 0 : index
    %c0_2 = arith.constant 0 : index
    %1 = vector.load %arg2[%c0_1, %c0_2] : memref<32x64xf32, #tpu.memory_space<vmem>>, vector<32x64xf32>
    %cst = arith.constant dense<0.000000e+00> : vector<8x64xf32>
    %2 = tpu.matmul %0, %1, %cst {dimension_numbers = #tpu.dot_dimension_numbers<[1], [0], [0], [1], [0, 0, 1, 1], [], []>} : vector<8x32xf32>, vector<32x64xf32>, vector<8x64xf32> -> vector<8x64xf32>
    %c0_3 = arith.constant 0 : index
    %c0_4 = arith.constant 0 : index
    %3 = vector.load %arg3[%c0_3, %c0_4] : memref<1x64xf32, #tpu.memory_space<vmem>>, vector<1x64xf32>
    %4 = vector.broadcast %3 : vector<1x64xf32> to vector<8x64xf32>
    %5 = arith.addf %2, %4 : vector<8x64xf32>
    %cst_5 = arith.constant 5.000000e-01 : f32
    %6 = vector.broadcast %cst_5 : f32 to vector<8x64xf32>
    %7 = arith.mulf %6, %5 : vector<8x64xf32>
    %cst_6 = arith.constant 0.707106769 : f32
    %8 = vector.broadcast %cst_6 : f32 to vector<8x64xf32>
    %9 = arith.mulf %5, %8 : vector<8x64xf32>
    %10 = math.erf %9 : vector<8x64xf32>
    %cst_7 = arith.constant 1.000000e+00 : f32
    %11 = vector.broadcast %cst_7 : f32 to vector<8x64xf32>
    %12 = arith.addf %11, %10 : vector<8x64xf32>
    %13 = arith.mulf %7, %12 : vector<8x64xf32>
    %c0_8 = arith.constant 0 : index
    %c0_9 = arith.constant 0 : index
    %14 = vector.load %arg4[%c0_8, %c0_9] : memref<64x32xf32, #tpu.memory_space<vmem>>, vector<64x32xf32>
    %cst_10 = arith.constant dense<0.000000e+00> : vector<8x32xf32>
    %15 = tpu.matmul %13, %14, %cst_10 {dimension_numbers = #tpu.dot_dimension_numbers<[1], [0], [0], [1], [0, 0, 1, 1], [], []>} : vector<8x64xf32>, vector<64x32xf32>, vector<8x32xf32> -> vector<8x32xf32>
    %c0_11 = arith.constant 0 : index
    %c0_12 = arith.constant 0 : index
    %16 = vector.load %arg5[%c0_11, %c0_12] : memref<1x32xf32, #tpu.memory_space<vmem>>, vector<1x32xf32>
    %17 = vector.broadcast %16 : vector<1x32xf32> to vector<8x32xf32>
    %18 = arith.addf %15, %17 : vector<8x32xf32>
    %c0_13 = arith.constant 0 : index
    %c0_14 = arith.constant 0 : index
    %19 = vector.load %arg6[%c0_13, %c0_14] : memref<8x32xf32, #tpu.memory_space<vmem>>, vector<8x32xf32>
    tpu.vector_store %arg6[%c0_13, %c0_14], %18 {strides = array<i32>} : memref<8x32xf32, #tpu.memory_space<vmem>>, vector<8x32xf32>,
    return
  }
  func.func @transform_0(%arg0: i32) -> (i32, i32) {
    %c0_i32 = arith.constant 0 : i32
    %c0_i32_0 = arith.constant 0 : i32
    return %arg0, %c0_i32 : i32, i32
  }
  func.func @transform_1(%arg0: i32) -> (i32, i32) {
    %c0_i32 = arith.constant 0 : i32
    %c0_i32_0 = arith.constant 0 : i32
    %c0_i32_1 = arith.constant 0 : i32
    return %c0_i32, %c0_i32_0 : i32, i32
  }
  func.func @transform_2(%arg0: i32) -> (i32, i32) {
    %c0_i32 = arith.constant 0 : i32
    %c0_i32_0 = arith.constant 0 : i32
    %c0_i32_1 = arith.constant 0 : i32
    return %c0_i32, %c0_i32_0 : i32, i32
  }
  func.func @transform_3(%arg0: i32) -> (i32, i32) {
    %c0_i32 = arith.constant 0 : i32
    %c0_i32_0 = arith.constant 0 : i32
    %c0_i32_1 = arith.constant 0 : i32
    return %c0_i32, %c0_i32_0 : i32, i32
  }
  func.func @transform_4(%arg0: i32) -> (i32, i32) {
    %c0_i32 = arith.constant 0 : i32
    %c0_i32_0 = arith.constant 0 : i32
    %c0_i32_1 = arith.constant 0 : i32
    return %c0_i32, %c0_i32_0 : i32, i32
  }
  func.func @transform_5(%arg0: i32) -> (i32, i32) {
    %c0_i32 = arith.constant 0 : i32
    %c0_i32_0 = arith.constant 0 : i32
    return %arg0, %c0_i32 : i32, i32
  }
}

module attributes {stable_mosaic.version = 11 : i64} {
  func.func @_mlp_kernel_resident(%arg0: i32, %arg1: memref<8x32xf32, #tpu.memory_space<vmem>>, %arg2: memref<32x64xf32, #tpu.memory_space<vmem>>, %arg3: memref<1x64xf32, #tpu.memory_space<vmem>>, %arg4: memref<64x32xf32, #tpu.memory_space<vmem>>, %arg5: memref<1x32xf32, #tpu.memory_space<vmem>>, %arg6: memref<8x32xf32, #tpu.memory_space<vmem>>) attributes {dimension_semantics = [#tpu.dimension_semantics<parallel>], iteration_bounds = array<i64: 2>, scalar_prefetch = 0 : i64, scratch_operands = 0 : i64, tpu.core_type = #tpu.core_type<tc>, window_params = [{transform_indices = @transform_0, window_bounds = array<i64: 8, 32>}, {pipeline_mode = #tpu.pipeline_mode<synchronous>, transform_indices = @transform_1, window_bounds = array<i64: 32, 64>}, {pipeline_mode = #tpu.pipeline_mode<synchronous>, transform_indices = @transform_2, window_bounds = array<i64: 1, 64>}, {pipeline_mode = #tpu.pipeline_mode<synchronous>, transform_indices = @transform_3, window_bounds = array<i64: 64, 32>}, {pipeline_mode = #tpu.pipeline_mode<synchronous>, transform_indices = @transform_4, window_bounds = array<i64: 1, 32>}, {transform_indices = @transform_5, window_bounds = array<i64: 8, 32>}]} {
    %c0 = arith.constant 0 : index
    %c0_0 = arith.constant 0 : index
    %0 = vector.load %arg1[%c0, %c0_0] : memref<8x32xf32, #tpu.memory_space<vmem>>, vector<8x32xf32>
    %c0_1 = arith.constant 0 : index
    %c0_2 = arith.constant 0 : index
    %1 = vector.load %arg2[%c0_1, %c0_2] : memref<32x64xf32, #tpu.memory_space<vmem>>, vector<32x64xf32>
    %cst = arith.constant dense<0.000000e+00> : vector<8x64xf32>
    %2 = tpu.matmul %0, %1, %cst {dimension_numbers = #tpu.dot_dimension_numbers<[1], [0], [0], [1], [0, 0, 1, 1], [], []>} : vector<8x32xf32>, vector<32x64xf32>, vector<8x64xf32> -> vector<8x64xf32>
    %c0_3 = arith.constant 0 : index
    %c0_4 = arith.constant 0 : index
    %3 = vector.load %arg3[%c0_3, %c0_4] : memref<1x64xf32, #tpu.memory_space<vmem>>, vector<1x64xf32>
    %4 = vector.broadcast %3 : vector<1x64xf32> to vector<8x64xf32>
    %5 = arith.addf %2, %4 : vector<8x64xf32>
    %cst_5 = arith.constant 5.000000e-01 : f32
    %6 = vector.broadcast %cst_5 : f32 to vector<8x64xf32>
    %7 = arith.mulf %6, %5 : vector<8x64xf32>
    %cst_6 = arith.constant 0.707106769 : f32
    %8 = vector.broadcast %cst_6 : f32 to vector<8x64xf32>
    %9 = arith.mulf %5, %8 : vector<8x64xf32>
    %10 = math.erf %9 : vector<8x64xf32>
    %cst_7 = arith.constant 1.000000e+00 : f32
    %11 = vector.broadcast %cst_7 : f32 to vector<8x64xf32>
    %12 = arith.addf %11, %10 : vector<8x64xf32>
    %13 = arith.mulf %7, %12 : vector<8x64xf32>
    %c0_8 = arith.constant 0 : index
    %c0_9 = arith.constant 0 : index
    %14 = vector.load %arg4[%c0_8, %c0_9] : memref<64x32xf32, #tpu.memory_space<vmem>>, vector<64x32xf32>
    %cst_10 = arith.constant dense<0.000000e+00> : vector<8x32xf32>
    %15 = tpu.matmul %13, %14, %cst_10 {dimension_numbers = #tpu.dot_dimension_numbers<[1], [0], [0], [1], [0, 0, 1, 1], [], []>} : vector<8x64xf32>, vector<64x32xf32>, vector<8x32xf32> -> vector<8x32xf32>
    %c0_11 = arith.constant 0 : index
    %c0_12 = arith.constant 0 : index
    %16 = vector.load %arg5[%c0_11, %c0_12] : memref<1x32xf32, #tpu.memory_space<vmem>>, vector<1x32xf32>
    %17 = vector.broadcast %16 : vector<1x32xf32> to vector<8x32xf32>
    %18 = arith.addf %15, %17 : vector<8x32xf32>
    %c0_13 = arith.constant 0 : index
    %c0_14 = arith.constant 0 : index
    %19 = vector.load %arg6[%c0_13, %c0_14] : memref<8x32xf32, #tpu.memory_space<vmem>>, vector<8x32xf32>
    tpu.vector_store %arg6[%c0_13, %c0_14], %18 {strides = array<i32>} : memref<8x32xf32, #tpu.memory_space<vmem>>, vector<8x32xf32>,
    return
  }
  func.func @transform_0(%arg0: i32) -> (i32, i32) {
    %c0_i32 = arith.constant 0 : i32
    %c0_i32_0 = arith.constant 0 : i32
    return %arg0, %c0_i32 : i32, i32
  }
  func.func @transform_1(%arg0: i32) -> (i32, i32) {
    %c0_i32 = arith.constant 0 : i32
    %c0_i32_0 = arith.constant 0 : i32
    %c0_i32_1 = arith.constant 0 : i32
    return %c0_i32, %c0_i32_0 : i32, i32
  }
  func.func @transform_2(%arg0: i32) -> (i32, i32) {
    %c0_i32 = arith.constant 0 : i32
    %c0_i32_0 = arith.constant 0 : i32
    %c0_i32_1 = arith.constant 0 : i32
    return %c0_i32, %c0_i32_0 : i32, i32
  }
  func.func @transform_3(%arg0: i32) -> (i32, i32) {
    %c0_i32 = arith.constant 0 : i32
    %c0_i32_0 = arith.constant 0 : i32
    %c0_i32_1 = arith.constant 0 : i32
    return %c0_i32, %c0_i32_0 : i32, i32
  }
  func.func @transform_4(%arg0: i32) -> (i32, i32) {
    %c0_i32 = arith.constant 0 : i32
    %c0_i32_0 = arith.constant 0 : i32
    %c0_i32_1 = arith.constant 0 : i32
    return %c0_i32, %c0_i32_0 : i32, i32
  }
  func.func @transform_5(%arg0: i32) -> (i32, i32) {
    %c0_i32 = arith.constant 0 : i32
    %c0_i32_0 = arith.constant 0 : i32
    return %arg0, %c0_i32 : i32, i32
  }
}

</mosaic_0001>

<bundles_post_ra>
// kernel: tpu_custom_call.1
= control target key start
LH: loop header
LB: loop body
LE: loop exit
PB: predicated region body
PF: predicated region fallthrough
CT: control target
= control target key end

     0   :  { %10 = vsyncpa [#allocation3], 0  ;;  %s807_s0 = inlined_call_operand.vmem [shape: f32[16,32], index: 0, kind: input, shape index: {}]   ;;  %s808_s1 = inlined_call_operand.vmem [shape: f32[32,64], index: 1, kind: input, shape index: {}]   ;;  %s809_s2 = inlined_call_operand.vmem [shape: f32[1,64], index: 2, kind: input, shape index: {}]   ;;  %s810_s3 = inlined_call_operand.vmem [shape: f32[64,32], index: 3, kind: input, shape index: {}]   ;;  %s811_s4 = inlined_call_operand.vmem [shape: f32[1,32], index: 4, kind: input, shape index: {}]   ;;  %s812_s5 = inlined_call_operand.hbm [shape: f32[16,32], index: 5, kind: output, shape index: {}]  }
   0x1   :  { %12 = vsyncpa [#allocation3 + $0x1], 0  ;;  %s670_s18 = smov 0   ;;  %s672_s19 = smov 0  }
   0x2   :  { %s674_s20 = smov 0   ;;  %s676_s21 = smov 0  }
   0x3 LB: > { %s691_s22 = sadd.s32 4294967295, %s635_s21   ;;  %s474_s23 = sadd.s32 4294967294, %s635_s21   ;;  %s635_s21 = sphi %s676_s21, %s818_s21   ;;  %s631_s20 = sphi %s674_s20, %s817_s20   ;;  %s627_s19 = sphi %s672_s19, %s816_s19   ;;  %s623_s18 = sphi %s670_s18, %s815_s18  }
   0x4   : > { %s695_s24 = sadd.s32 1, %s635_s21   ;;  %s135_s25 = sadd.s32 1, %s631_s20 }
   0x5   : > { %s132_s26 = ssub.s32 %s635_s21, %s695_s24  ;;  %p145_p0 = scmp.ne.s32.totalorder %s631_s20, %s627_s19 }
   0x6   : > { %p133_p1 = scmp.eq.s32.totalorder %s132_s26, 0  ;;  %p146_p2 = scmp.eq.s32.totalorder %s691_s22, 1 }
   0x7   : > { %p151_p3 = scmp.ne.s32.totalorder %s627_s19, %s623_s18  ;;  %p152_p4 = scmp.eq.s32.totalorder %s474_s23, 1 }
   0x8   : > { %s706_s27 = scalar_select %p133_p1, %s631_s20, %s135_s25  }
   0x9   : > { %p708_p5 = por %p146_p2, %p145_p0  ;;  %p712_p6 = por %p152_p4, %p151_p3 }
   0xa   : > { %p477_p7 = scmp.ge.s32.totalorder %s635_s21, 1  ;;  %p189_p8 = scmp.lt.s32.totalorder %s635_s21, 3 }
   0xc   : > { %p190_p9 = pnand %p477_p7, %p189_p8 }
   0xd   : > { %p216_p10 = scmp.lt.s32.totalorder (!%p190_p9), %s691_s22, 1  ;;  %s213_s26 = sand.u32 (!%p190_p9), 1, %s627_s19  }
   0xe   : > { %193 = sbr.rel (%p190_p9) target bundleno = 451 (0x1c3), region = 40  ;;  %s478_s30 = sshll.u32 (!%p190_p9), %s213_s26, 3 }
   0xf   : > { %s485_s8 = sshll.u32 (!%p190_p9), %s691_s22, 7  ;;  %s402_s14 = scalar_lea.sflag (!%p190_p9), [#allocation3], %s213_s26 }
  0x10   : > { %s771_s13 = scalar_lea.hbm (!%p190_p9), %s812_s5, %s485_s8 }
  0x13   : > { %v224_v0 = vld [vmem:[%s808_s1 + $0x18] sm:$0xff]  ;;  %v637_v1 = vmov 0.0   ;;  %v223_v2 = vld [vmem:[%s808_s1 + $0x10] sm:$0xff]  ;;  %vm638_vm0 = vmmov 0   ;;  %s217_s9 = scalar_select %p216_p10, %s691_s22, 1  ;;  %v222_v3 = vld [vmem:[%s808_s1 + $0x8] sm:$0xff] }
  0x14   : > { %502 = vmatprep.subr.mxu0 %v637_v1  ;;  %510 = vmatprep.mubr.msk.f32.mxu0 %vm638_vm0, %v637_v1  ;;  %v221_v4 = vld [vmem:[%s808_s1] sm:$0xff]  ;;  %vm232_vm1 = vcmask 261120   ;;  %v318_v6 = vld [vmem:[%s810_s3 + $0x38] sm:$0xff]  ;;  %v317_v7 = vld [vmem:[%s810_s3 + $0x30] sm:$0xff]  ;;  %vm326_vm2 = vcmask 523264   ;;  %s639_s22 = smov [#allocation2]  }
  0x15   : > { %503 = vmatpush3.msra.mxu0 %v224_v0  ;;  %513 = vmatprep.subr.mxu1 %v637_v1  ;;  %s479_s12 = sshll.u32 %s217_s9, 3  ;;  %v316_v8 = vld [vmem:[%s810_s3 + $0x28] sm:$0xff]  ;;  %v315_v9 = vld [vmem:[%s810_s3 + $0x20] sm:$0xff]  ;;  %v314_v10 = vld [vmem:[%s810_s3 + $0x18] sm:$0xff]  ;;  %s215_s9 = scalar_lea.vmem [#allocation2], %s478_s30 }
  0x16   : > { %504 = vmatprep.subr.mxu0 %v637_v1  ;;  %529 = vmatprep.mubr.msk.f32.mxu1 %vm638_vm0, %v637_v1  ;;  %s219_s17 = scalar_lea.vmem %s807_s0, %s479_s12  ;;  %v313_v11 = vld [vmem:[%s810_s3 + $0x10] sm:$0xff]  ;;  %v312_v12 = vld [vmem:[%s810_s3 + $0x8] sm:$0xff]  ;;  %v311_v13 = vld [vmem:[%s810_s3] sm:$0xff]  ;;  %s415_s10 = sshll.u32 %s215_s9, 4  ;;  %s416_s10 = int_to_ptr.vmem [resolvable:$true] %s415_s10 }
  0x17   : > { %505 = vmatpush3.msra.mxu0 %v223_v2  ;;  %v220_v5 = vld [vmem:[%s219_s17] sm:$0xff]  ;;  %514 = vmatpush3.msra.mxu1 %v318_v6  ;;  %s575_s15 = scalar_lea.vmem %s416_s10, 128  ;;  %s579_s16 = sshll.u32 %s639_s22, 4  ;;  %s580_s16 = int_to_ptr.vmem [resolvable:$false] %s579_s16 }
  0x18   : > { %506 = vmatprep.subr.mxu0 %v637_v1  ;;  %515 = vmatprep.subr.mxu1 %v637_v1  ;;  %v480_v14 = vld [vmem:[%s809_s2] ss:$0 sm:$0xff]  ;;  %p576_p11 = scmp.ne.s32.totalorder %s416_s10, %s575_s15  ;;  %s581_s17 = scalar_lea.vmem %s580_s16, 256 }
  0x19   : > { %507 = vmatpush3.msra.mxu0 %v222_v3  ;;  %516 = vmatpush3.msra.mxu1 %v317_v7  ;;  %v482_v23 = vld [vmem:[%s811_s4] ss:$0 sm:$0xff]  ;;  %p582_p0 = scmp.lt.s32.totalorder %s416_s10, %s580_s16  ;;  %p583_p1 = scmp.lt.s32.totalorder %s581_s17, %s575_s15 }
  0x1a   : > { %508 = vmatprep.subr.mxu0 %v637_v1  ;;  %517 = vmatprep.subr.mxu1 %v637_v1  ;;  %p577_p12 = pnand %p576_p11, %p708_p5 }
  0x1b   : > { %509 = vmatpush3.msra.mxu0 %v221_v4  ;;  %518 = vmatpush3.msra.mxu1 %v316_v8  ;;  %p584_p2 = por %p583_p1, %p582_p0 }
  0x1c   : > { %511 = vmatmul.mubr.msk.f32.vlgmr.msra.gmra.mxu0 %vm232_vm1, %v220_v5  ;;  %519 = vmatprep.subr.mxu1 %v637_v1  ;;  %p578_p13 = pneg %p577_p12 }
  0x1d   : > { %520 = vmatpush3.msra.mxu1 %v315_v9 }
  0x1e   : > { %521 = vmatprep.subr.mxu1 %v637_v1  ;;  %p585_p3 = pnand %p584_p2, %p578_p13 }
  0x1f   : > { %522 = vmatpush3.msra.mxu1 %v314_v10 }
  0x20   : > { %523 = vmatprep.subr.mxu1 %v637_v1 }
  0x21   : > { %524 = vmatpush3.msra.mxu1 %v313_v11 }
  0x22   : > { %525 = vmatprep.subr.mxu1 %v637_v1 }
  0x23   : > { %526 = vmatpush3.msra.mxu1 %v312_v12 }
  0x24   : > { %527 = vmatprep.subr.mxu1 %v637_v1 }
  0x25   : > { %528 = vmatpush3.msra.mxu1 %v311_v13 }
  0xdc   : > { %v302_v15 = vpop.f32.mrf.mxu0 }
  0xdd   : > { %v303_v16 = vadd.f32 %v480_v14, %v302_v15 }
  0xde   : > { %v512_v17 = vpop.f32.mrf.mxu0 }
  0xdf   : > { %v307_v18 = vmul.f32 0.70710677, %v303_v16  ;;  %v306_v20 = vmul.f32 0.5, %v303_v16 }
  0xe1   : > { %573 = verf.f32 %v307_v18 }
  0xee   : > { %v574_v19 = vpop.eup %573 }
  0xef   : > { %v309_v21 = vadd.f32 1.0, %v574_v19 }
  0xf1   : > { %v310_v22 = vmul.f32 %v309_v21, %v306_v20 }
  0xf3   : > { %530 = vmatmul.mubr.msk.f32.vlgmr.msra.gmra.mxu1 %vm326_vm2, %v310_v22 }
 0x1b3   : > { %v396_v24 = vpop.f32.mrf.mxu1 }
 0x1b4   : > { %v397_v25 = vadd.f32 %v482_v23, %v396_v24 }
 0x1b5   : > { %v531_v26 = vpop.f32.mrf.mxu1 }
 0x1b6   : > { %400 = vst.msk [vmem:[%s215_s9] sm:$0xff] %vm232_vm1, %v397_v25 }
 0x1b7   : > { %588 = shalt.err (!%p585_p3)
}
 0x1b8   : > { %s589_s23 = scalar_lea.hbm %s771_s13, 128  ;;  %s593_s30 = scalar_lea.hbm %s812_s5, 256 }
 0x1b9   : > { %p590_p4 = scmp.ne.s32.totalorder %s771_s13, %s589_s23  ;;  %p594_p9 = scmp.lt.s32.totalorder %s771_s13, %s812_s5 }
 0x1ba   : > { %p595_p10 = scmp.lt.s32.totalorder %s593_s30, %s589_s23 }
 0x1bb   : > { %p591_p7 = pnand %p590_p4, %p708_p5 }
 0x1bc   : > { %p596_p11 = por %p595_p10, %p594_p9 }
 0x1bd   : > { %p592_p8 = pneg %p591_p7 }
 0x1bf   : > { %p597_p12 = pnand %p596_p11, %p592_p8 }
 0x1c1   : > { %600 = shalt.err (!%p597_p12)
}
 0x1c2   : > { %532 = dma.vmem_to_hbm [thread:$0]  (%p708_p5), %s416_s10, 128, %s771_s13, %s402_s14  }
 0x1c3 PF: > { %p538_p13 = scmp.ge.s32.totalorder %s635_s21, 2  ;;  %s427_s8 = sand.u32 1, %s623_s18  }
 0x1c4   : > { %s428_s9 = scalar_lea.sflag [#allocation3], %s427_s8 }
 0x1c5   : > { %p535_p0 = pnand %p538_p13, %p712_p6 }
 0x1c7   : > { %p536_p1 = pneg %p535_p0 }
 0x1c9   : > { %618 = dma.done.wait (%p536_p1), %s428_s9, 128  }
 0x1ca   : > { %620 = vsyncadd (%p536_p1), %s428_s9, 4294967168  ;;  %p15_p2 = scmp.ge.s32.totalorder %s695_s24, 4   ;;  %s815_s18 = smov %s627_s19 }
 0x1cb   : > { %s816_s19 = smov %s631_s20  ;;  %s817_s20 = smov %s706_s27 }
 0x1cc   : > { %s818_s21 = smov %s695_s24  ;;  %17 = sbr.rel (!%p15_p2) target bundleno = 3 (0x3), region = 75 }
 0x1d1   :  { %433 = vsyncpa [#allocation3], 1 }
 0x1d2   :  { %435 = vsyncpa [#allocation3 + $0x1], 1 }

// kernel: tpu_custom_call.1
= control target key start
LH: loop header
LB: loop body
LE: loop exit
PB: predicated region body
PF: predicated region fallthrough
CT: control target
= control target key end

     0   :  { %10 = vsyncpa [#allocation3], 0  ;;  %s807_s0 = inlined_call_operand.vmem [shape: f32[16,32], index: 0, kind: input, shape index: {}]   ;;  %s808_s1 = inlined_call_operand.vmem [shape: f32[32,64], index: 1, kind: input, shape index: {}]   ;;  %s809_s2 = inlined_call_operand.vmem [shape: f32[1,64], index: 2, kind: input, shape index: {}]   ;;  %s810_s3 = inlined_call_operand.vmem [shape: f32[64,32], index: 3, kind: input, shape index: {}]   ;;  %s811_s4 = inlined_call_operand.vmem [shape: f32[1,32], index: 4, kind: input, shape index: {}]   ;;  %s812_s5 = inlined_call_operand.hbm [shape: f32[16,32], index: 5, kind: output, shape index: {}]  }
   0x1   :  { %12 = vsyncpa [#allocation3 + $0x1], 0  ;;  %s670_s18 = smov 0   ;;  %s672_s19 = smov 0  }
   0x2   :  { %s674_s20 = smov 0   ;;  %s676_s21 = smov 0  }
   0x3 LB: > { %s691_s22 = sadd.s32 4294967295, %s635_s21   ;;  %s474_s23 = sadd.s32 4294967294, %s635_s21   ;;  %s635_s21 = sphi %s676_s21, %s818_s21   ;;  %s631_s20 = sphi %s674_s20, %s817_s20   ;;  %s627_s19 = sphi %s672_s19, %s816_s19   ;;  %s623_s18 = sphi %s670_s18, %s815_s18  }
   0x4   : > { %s695_s24 = sadd.s32 1, %s635_s21   ;;  %s135_s25 = sadd.s32 1, %s631_s20 }
   0x5   : > { %s132_s26 = ssub.s32 %s635_s21, %s695_s24  ;;  %p145_p0 = scmp.ne.s32.totalorder %s631_s20, %s627_s19 }
   0x6   : > { %p133_p1 = scmp.eq.s32.totalorder %s132_s26, 0  ;;  %p146_p2 = scmp.eq.s32.totalorder %s691_s22, 1 }
   0x7   : > { %p151_p3 = scmp.ne.s32.totalorder %s627_s19, %s623_s18  ;;  %p152_p4 = scmp.eq.s32.totalorder %s474_s23, 1 }
   0x8   : > { %s706_s27 = scalar_select %p133_p1, %s631_s20, %s135_s25  }
   0x9   : > { %p708_p5 = por %p146_p2, %p145_p0  ;;  %p712_p6 = por %p152_p4, %p151_p3 }
   0xa   : > { %p477_p7 = scmp.ge.s32.totalorder %s635_s21, 1  ;;  %p189_p8 = scmp.lt.s32.totalorder %s635_s21, 3 }
   0xc   : > { %p190_p9 = pnand %p477_p7, %p189_p8 }
   0xd   : > { %p216_p10 = scmp.lt.s32.totalorder (!%p190_p9), %s691_s22, 1  ;;  %s213_s26 = sand.u32 (!%p190_p9), 1, %s627_s19  }
   0xe   : > { %193 = sbr.rel (%p190_p9) target bundleno = 451 (0x1c3), region = 40  ;;  %s478_s30 = sshll.u32 (!%p190_p9), %s213_s26, 3 }
   0xf   : > { %s485_s8 = sshll.u32 (!%p190_p9), %s691_s22, 7  ;;  %s402_s14 = scalar_lea.sflag (!%p190_p9), [#allocation3], %s213_s26 }
  0x10   : > { %s771_s13 = scalar_lea.hbm (!%p190_p9), %s812_s5, %s485_s8 }
  0x13   : > { %v224_v0 = vld [vmem:[%s808_s1 + $0x18] sm:$0xff]  ;;  %v637_v1 = vmov 0.0   ;;  %v223_v2 = vld [vmem:[%s808_s1 + $0x10] sm:$0xff]  ;;  %vm638_vm0 = vmmov 0   ;;  %s217_s9 = scalar_select %p216_p10, %s691_s22, 1  ;;  %v222_v3 = vld [vmem:[%s808_s1 + $0x8] sm:$0xff] }
  0x14   : > { %502 = vmatprep.subr.mxu0 %v637_v1  ;;  %510 = vmatprep.mubr.msk.f32.mxu0 %vm638_vm0, %v637_v1  ;;  %v221_v4 = vld [vmem:[%s808_s1] sm:$0xff]  ;;  %vm232_vm1 = vcmask 261120   ;;  %v318_v6 = vld [vmem:[%s810_s3 + $0x38] sm:$0xff]  ;;  %v317_v7 = vld [vmem:[%s810_s3 + $0x30] sm:$0xff]  ;;  %vm326_vm2 = vcmask 523264   ;;  %s639_s22 = smov [#allocation2]  }
  0x15   : > { %503 = vmatpush3.msra.mxu0 %v224_v0  ;;  %513 = vmatprep.subr.mxu1 %v637_v1  ;;  %s479_s12 = sshll.u32 %s217_s9, 3  ;;  %v316_v8 = vld [vmem:[%s810_s3 + $0x28] sm:$0xff]  ;;  %v315_v9 = vld [vmem:[%s810_s3 + $0x20] sm:$0xff]  ;;  %v314_v10 = vld [vmem:[%s810_s3 + $0x18] sm:$0xff]  ;;  %s215_s9 = scalar_lea.vmem [#allocation2], %s478_s30 }
  0x16   : > { %504 = vmatprep.subr.mxu0 %v637_v1  ;;  %529 = vmatprep.mubr.msk.f32.mxu1 %vm638_vm0, %v637_v1  ;;  %s219_s17 = scalar_lea.vmem %s807_s0, %s479_s12  ;;  %v313_v11 = vld [vmem:[%s810_s3 + $0x10] sm:$0xff]  ;;  %v312_v12 = vld [vmem:[%s810_s3 + $0x8] sm:$0xff]  ;;  %v311_v13 = vld [vmem:[%s810_s3] sm:$0xff]  ;;  %s415_s10 = sshll.u32 %s215_s9, 4  ;;  %s416_s10 = int_to_ptr.vmem [resolvable:$true] %s415_s10 }
  0x17   : > { %505 = vmatpush3.msra.mxu0 %v223_v2  ;;  %v220_v5 = vld [vmem:[%s219_s17] sm:$0xff]  ;;  %514 = vmatpush3.msra.mxu1 %v318_v6  ;;  %s575_s15 = scalar_lea.vmem %s416_s10, 128  ;;  %s579_s16 = sshll.u32 %s639_s22, 4  ;;  %s580_s16 = int_to_ptr.vmem [resolvable:$false] %s579_s16 }
  0x18   : > { %506 = vmatprep.subr.mxu0 %v637_v1  ;;  %515 = vmatprep.subr.mxu1 %v637_v1  ;;  %v480_v14 = vld [vmem:[%s809_s2] ss:$0 sm:$0xff]  ;;  %p576_p11 = scmp.ne.s32.totalorder %s416_s10, %s575_s15  ;;  %s581_s17 = scalar_lea.vmem %s580_s16, 256 }
  0x19   : > { %507 = vmatpush3.msra.mxu0 %v222_v3  ;;  %516 = vmatpush3.msra.mxu1 %v317_v7  ;;  %v482_v23 = vld [vmem:[%s811_s4] ss:$0 sm:$0xff]  ;;  %p582_p0 = scmp.lt.s32.totalorder %s416_s10, %s580_s16  ;;  %p583_p1 = scmp.lt.s32.totalorder %s581_s17, %s575_s15 }
  0x1a   : > { %508 = vmatprep.subr.mxu0 %v637_v1  ;;  %517 = vmatprep.subr.mxu1 %v637_v1  ;;  %p577_p12 = pnand %p576_p11, %p708_p5 }
  0x1b   : > { %509 = vmatpush3.msra.mxu0 %v221_v4  ;;  %518 = vmatpush3.msra.mxu1 %v316_v8  ;;  %p584_p2 = por %p583_p1, %p582_p0 }
  0x1c   : > { %511 = vmatmul.mubr.msk.f32.vlgmr.msra.gmra.mxu0 %vm232_vm1, %v220_v5  ;;  %519 = vmatprep.subr.mxu1 %v637_v1  ;;  %p578_p13 = pneg %p577_p12 }
  0x1d   : > { %520 = vmatpush3.msra.mxu1 %v315_v9 }
  0x1e   : > { %521 = vmatprep.subr.mxu1 %v637_v1  ;;  %p585_p3 = pnand %p584_p2, %p578_p13 }
  0x1f   : > { %522 = vmatpush3.msra.mxu1 %v314_v10 }
  0x20   : > { %523 = vmatprep.subr.mxu1 %v637_v1 }
  0x21   : > { %524 = vmatpush3.msra.mxu1 %v313_v11 }
  0x22   : > { %525 = vmatprep.subr.mxu1 %v637_v1 }
  0x23   : > { %526 = vmatpush3.msra.mxu1 %v312_v12 }
  0x24   : > { %527 = vmatprep.subr.mxu1 %v637_v1 }
  0x25   : > { %528 = vmatpush3.msra.mxu1 %v311_v13 }
  0xdc   : > { %v302_v15 = vpop.f32.mrf.mxu0 }
  0xdd   : > { %v303_v16 = vadd.f32 %v480_v14, %v302_v15 }
  0xde   : > { %v512_v17 = vpop.f32.mrf.mxu0 }
  0xdf   : > { %v307_v18 = vmul.f32 0.70710677, %v303_v16  ;;  %v306_v20 = vmul.f32 0.5, %v303_v16 }
  0xe1   : > { %573 = verf.f32 %v307_v18 }
  0xee   : > { %v574_v19 = vpop.eup %573 }
  0xef   : > { %v309_v21 = vadd.f32 1.0, %v574_v19 }
  0xf1   : > { %v310_v22 = vmul.f32 %v309_v21, %v306_v20 }
  0xf3   : > { %530 = vmatmul.mubr.msk.f32.vlgmr.msra.gmra.mxu1 %vm326_vm2, %v310_v22 }
 0x1b3   : > { %v396_v24 = vpop.f32.mrf.mxu1 }
 0x1b4   : > { %v397_v25 = vadd.f32 %v482_v23, %v396_v24 }
 0x1b5   : > { %v531_v26 = vpop.f32.mrf.mxu1 }
 0x1b6   : > { %400 = vst.msk [vmem:[%s215_s9] sm:$0xff] %vm232_vm1, %v397_v25 }
 0x1b7   : > { %588 = shalt.err (!%p585_p3)
}
 0x1b8   : > { %s589_s23 = scalar_lea.hbm %s771_s13, 128  ;;  %s593_s30 = scalar_lea.hbm %s812_s5, 256 }
 0x1b9   : > { %p590_p4 = scmp.ne.s32.totalorder %s771_s13, %s589_s23  ;;  %p594_p9 = scmp.lt.s32.totalorder %s771_s13, %s812_s5 }
 0x1ba   : > { %p595_p10 = scmp.lt.s32.totalorder %s593_s30, %s589_s23 }
 0x1bb   : > { %p591_p7 = pnand %p590_p4, %p708_p5 }
 0x1bc   : > { %p596_p11 = por %p595_p10, %p594_p9 }
 0x1bd   : > { %p592_p8 = pneg %p591_p7 }
 0x1bf   : > { %p597_p12 = pnand %p596_p11, %p592_p8 }
 0x1c1   : > { %600 = shalt.err (!%p597_p12)
}
 0x1c2   : > { %532 = dma.vmem_to_hbm [thread:$0]  (%p708_p5), %s416_s10, 128, %s771_s13, %s402_s14  }
 0x1c3 PF: > { %p538_p13 = scmp.ge.s32.totalorder %s635_s21, 2  ;;  %s427_s8 = sand.u32 1, %s623_s18  }
 0x1c4   : > { %s428_s9 = scalar_lea.sflag [#allocation3], %s427_s8 }
 0x1c5   : > { %p535_p0 = pnand %p538_p13, %p712_p6 }
 0x1c7   : > { %p536_p1 = pneg %p535_p0 }
 0x1c9   : > { %618 = dma.done.wait (%p536_p1), %s428_s9, 128  }
 0x1ca   : > { %620 = vsyncadd (%p536_p1), %s428_s9, 4294967168  ;;  %p15_p2 = scmp.ge.s32.totalorder %s695_s24, 4   ;;  %s815_s18 = smov %s627_s19 }
 0x1cb   : > { %s816_s19 = smov %s631_s20  ;;  %s817_s20 = smov %s706_s27 }
 0x1cc   : > { %s818_s21 = smov %s695_s24  ;;  %17 = sbr.rel (!%p15_p2) target bundleno = 3 (0x3), region = 75 }
 0x1d1   :  { %433 = vsyncpa [#allocation3], 1 }
 0x1d2   :  { %435 = vsyncpa [#allocation3 + $0x1], 1 }

</bundles_post_ra>
